<compile_context>
chip_gen: v7x
topology: tpu7x:2x2x1
jax: 0.10.0
libtpu: 0.0.40
codegen_flags: <defaults>
</compile_context>

<pallas_src>
import functools

import numpy as np
import jax
import jax.numpy as jnp
from jax.experimental import pallas as pl
from jax.experimental.pallas import tpu as pltpu

# 48 MiB scoped VMEM: ample for 512-row tiles + resident weights, still leaves
# headroom under v7x's 64 MiB/TC physical VMEM (v5e/v6e have 128 MiB).
_VMEM_LIMIT = 48 * 1024 * 1024


def _round_up(v, m):
    return ((v + m - 1) // m) * m


def _row_tile(m, tile_m):
    return _round_up(min(tile_m, _round_up(m, 8)), 8)


# ----------------------------------------------------------------------------
# Kernel 1: fused linear  y = act(x @ W + b)    (resident W/b, bf16 MXU, f32 acc)
# ----------------------------------------------------------------------------
def _linear_kernel(x_ref, w_ref, b_ref, o_ref, *, activation):
    xb = x_ref[...].astype(jnp.bfloat16)                 # cast in VMEM (free VPU work)
    acc = jnp.dot(xb, w_ref[...], preferred_element_type=jnp.float32)
    acc = acc + b_ref[...]
    if activation == "relu":
        acc = jnp.maximum(acc, 0.0)
    elif activation == "tanh":
        acc = jnp.tanh(acc)
    o_ref[...] = acc.astype(o_ref.dtype)


def linear_pallas(x, w, b, activation=None, *, tile_m=512):
    M, K = x.shape
    Kw, N = w.shape
    assert K == Kw
    Np = _round_up(N, 128)          # only the tiny classifier head (N=8) actually pads
    tm = _row_tile(M, tile_m)

    wp = jnp.pad(w, ((0, 0), (0, Np - N))) if Np != N else w
    wp = wp.astype(jnp.bfloat16)                       # half weight DMA bytes
    bp = (jnp.pad(b, (0, Np - N)) if Np != N else b).astype(jnp.float32).reshape(1, Np)

    out = pl.pallas_call(
        functools.partial(_linear_kernel, activation=activation),
        out_shape=jax.ShapeDtypeStruct((M, Np), x.dtype),
        grid_spec=pltpu.PrefetchScalarGridSpec(
            num_scalar_prefetch=0,
            grid=(pl.cdiv(M, tm),),                    # ragged last tile -> masked store
            in_specs=[
                pl.BlockSpec((tm, K), lambda i: (i, 0)),
                pl.BlockSpec((K, Np), lambda i: (0, 0)),   # resident: fetched once
                pl.BlockSpec((1, Np), lambda i: (0, 0)),
            ],
            out_specs=pl.BlockSpec((tm, Np), lambda i: (i, 0)),
        ),
        compiler_params=pltpu.CompilerParams(
            # NOTE(v7x): grid extent over M should be >1 for large graphs so both TCs work.
            dimension_semantics=("parallel",),
            vmem_limit_bytes=_VMEM_LIMIT,
        ),
    )(x, wp, bp)
    return out if Np == N else out[:, :N]


# ----------------------------------------------------------------------------
# Kernel 2: fused SAGEConv combine  y = act([agg ‖ x] @ [Wl;Wr] + b)
#           (single K=2*hidden dot fills the 256-deep MXU on v6e/v7x)
# ----------------------------------------------------------------------------
def _sage_kernel(agg_ref, x_ref, w_ref, b_ref, o_ref, *, activation):
    ax = jnp.concatenate([agg_ref[...], x_ref[...]], axis=1).astype(jnp.bfloat16)
    acc = jnp.dot(ax, w_ref[...], preferred_element_type=jnp.float32) + b_ref[...]
    if activation == "relu":
        acc = jnp.maximum(acc, 0.0)
    o_ref[...] = acc.astype(o_ref.dtype)


def sage_combine_pallas(agg, x, w_l, w_r, b, activation=None, *, tile_m=512):
    M, K = x.shape
    N = w_l.shape[1]
    Np = _round_up(N, 128)
    tm = _row_tile(M, tile_m)

    w_cat = jnp.concatenate([w_l, w_r], axis=0)        # (2K, N): [agg‖x]@[Wl;Wr]=agg@Wl+x@Wr
    if Np != N:
        w_cat = jnp.pad(w_cat, ((0, 0), (0, Np - N)))
    w_cat = w_cat.astype(jnp.bfloat16)
    bp = (jnp.pad(b, (0, Np - N)) if Np != N else b).astype(jnp.float32).reshape(1, Np)

    out = pl.pallas_call(
        functools.partial(_sage_kernel, activation=activation),
        out_shape=jax.ShapeDtypeStruct((M, Np), x.dtype),
        grid_spec=pltpu.PrefetchScalarGridSpec(
            num_scalar_prefetch=0,
            grid=(pl.cdiv(M, tm),),
            in_specs=[
                pl.BlockSpec((tm, K), lambda i: (i, 0)),
                pl.BlockSpec((tm, K), lambda i: (i, 0)),
                pl.BlockSpec((2 * K, Np), lambda i: (0, 0)),   # resident stacked weight
                pl.BlockSpec((1, Np), lambda i: (0, 0)),
            ],
            out_specs=pl.BlockSpec((tm, Np), lambda i: (i, 0)),
        ),
        compiler_params=pltpu.CompilerParams(
            dimension_semantics=("parallel",),
            vmem_limit_bytes=_VMEM_LIMIT,
        ),
    )(agg, x, w_cat, bp)
    return out if Np == N else out[:, :N]


# ----------------------------------------------------------------------------
# Kernel 3: NumPredictor  degree = relu(x @ w + b)  (N=1 -> VPU lane-reduction)
#           with the clipped int32 degree fused into the epilogue.
# ----------------------------------------------------------------------------
def _reg_kernel(x_ref, w_ref, b_ref, deg_ref, degi_ref, *, num_pred):
    y = jnp.sum(x_ref[...] * w_ref[...], axis=1, keepdims=True) + b_ref[...]
    y = jnp.maximum(y, 0.0)                              # relu (guarantees y >= 0)
    deg_ref[...] = y.astype(deg_ref.dtype)
    # round-half-to-even == torch.round; clip before the int cast.
    degi_ref[...] = jnp.clip(jnp.round(y), 0.0, float(num_pred)).astype(jnp.int32)


def num_predictor_pallas(x, w, b, num_pred, *, tile_m=512):
    M, K = x.shape
    assert w.shape == (K, 1)
    tm = _row_tile(M, tile_m)
    w_row = w.reshape(1, K).astype(jnp.float32)          # broadcast row
    bp = b.reshape(1, 1).astype(jnp.float32)

    deg, deg_int = pl.pallas_call(
        functools.partial(_reg_kernel, num_pred=num_pred),
        out_shape=(jax.ShapeDtypeStruct((M, 1), jnp.float32),
                   jax.ShapeDtypeStruct((M, 1), jnp.int32)),
        grid_spec=pltpu.PrefetchScalarGridSpec(
            num_scalar_prefetch=0,
            grid=(pl.cdiv(M, tm),),
            in_specs=[
                pl.BlockSpec((tm, K), lambda i: (i, 0)),
                pl.BlockSpec((1, K), lambda i: (0, 0)),
                pl.BlockSpec((1, 1), lambda i: (0, 0)),
            ],
            out_specs=[
                pl.BlockSpec((tm, 1), lambda i: (i, 0)),
                pl.BlockSpec((tm, 1), lambda i: (i, 0)),
            ],
        ),
        compiler_params=pltpu.CompilerParams(
            dimension_semantics=("parallel",),
            vmem_limit_bytes=_VMEM_LIMIT,
        ),
    )(x, w_row, bp)
    return deg, deg_int


# ----------------------------------------------------------------------------
# Kernel 4: row-tiled fill_feats = vstack(x, gen_feats)   (pipelined HBM copy)
# ----------------------------------------------------------------------------
def _fill_feats_kernel(x_ref, gen_ref, o_ref, *, nbx):
    i = pl.program_id(0)

    @pl.when(i < nbx)
    def _():
        o_ref[...] = x_ref[...]

    @pl.when(i >= nbx)
    def _():
        o_ref[...] = gen_ref[...]


def fill_feats_pallas(x, gen_flat):
    n_x, f = x.shape
    n_g, f2 = gen_flat.shape
    assert f == f2
    # Biggest row tile (<= ~4 MiB/block) that divides n_x so the gen half starts on a
    # block boundary (aligned, unmasked stores).  n_g = n_x * num_pred divides too.
    itemsize = jnp.dtype(x.dtype).itemsize
    cap_rows = max(8, (4 * 1024 * 1024) // (f * itemsize))
    tm = None
    for cand in (1024, 512, 256, 128, 64, 32, 16, 8):
        if cand <= cap_rows and n_x % cand == 0 and n_g % cand == 0:
            tm = cand
            break
    if tm is None:
        # TODO(synk): irregular row counts (n_x % 8 != 0) fall back to XLA concat.
        return jnp.concatenate([x, gen_flat], axis=0)

    nbx = n_x // tm
    nbg = n_g // tm
    return pl.pallas_call(
        functools.partial(_fill_feats_kernel, nbx=nbx),
        out_shape=jax.ShapeDtypeStruct((n_x + n_g, f), x.dtype),
        grid_spec=pltpu.PrefetchScalarGridSpec(
            num_scalar_prefetch=0,
            grid=(nbx + nbg,),
            in_specs=[
                # block index saturates -> no redundant refetch once past its half
                pl.BlockSpec((tm, f), lambda i: (jnp.minimum(i, nbx - 1), 0)),
                pl.BlockSpec((tm, f), lambda i: (jnp.maximum(i - nbx, 0), 0)),
            ],
            out_specs=pl.BlockSpec((tm, f), lambda i: (i, 0)),
        ),
        compiler_params=pltpu.CompilerParams(
            dimension_semantics=("parallel",),
            vmem_limit_bytes=_VMEM_LIMIT,
        ),
    )(x, gen_flat)


# ----------------------------------------------------------------------------
# Graph aggregation (mean over incoming edges) — data-dependent gather/scatter.
# TODO(synk): left to XLA; no clean static-shape Pallas grid for edge scatter.
# ----------------------------------------------------------------------------
def segment_mean(feats, edge_index, num_nodes):
    src, dst = edge_index[0], edge_index[1]
    msg = feats[src]
    summed = jax.ops.segment_sum(msg, dst, num_segments=num_nodes)
    cnt = jax.ops.segment_sum(jnp.ones(src.shape, feats.dtype), dst, num_segments=num_nodes)
    return summed / jnp.maximum(cnt, 1.0)[:, None]


# ----------------------------------------------------------------------------
# Modules (parameters held in dicts; forward fns call the Pallas kernels)
# ----------------------------------------------------------------------------
def init_linear(key, in_dim, out_dim):
    w = jax.random.normal(key, (in_dim, out_dim), jnp.float32) * np.sqrt(2.0 / in_dim)
    return {"w": w, "b": jnp.zeros((out_dim,), jnp.float32)}


def init_sage(key, in_dim, out_dim):
    kl, kr = jax.random.split(key)
    return {
        "wl": jax.random.normal(kl, (in_dim, out_dim), jnp.float32) * np.sqrt(2.0 / in_dim),
        "wr": jax.random.normal(kr, (in_dim, out_dim), jnp.float32) * np.sqrt(2.0 / in_dim),
        "b": jnp.zeros((out_dim,), jnp.float32),
    }


def gnn_layer_forward(params, x, edge_index, linear):
    n = x.shape[0]
    agg = segment_mean(x, edge_index, n)
    h = sage_combine_pallas(agg, x, params["sage1"]["wl"], params["sage1"]["wr"],
                            params["sage1"]["b"], activation=None if linear else "relu")
    agg2 = segment_mean(h, edge_index, n)
    return sage_combine_pallas(agg2, h, params["sage2"]["wl"], params["sage2"]["wr"],
                               params["sage2"]["b"], activation="relu")


def feat_generator_forward(params, x, noise):
    h = x + noise                                    # Sampling()
    h = linear_pallas(h, params["fc1"]["w"], params["fc1"]["b"], "relu")
    h = linear_pallas(h, params["fc2"]["w"], params["fc2"]["b"], "relu")
    # TODO(synk): dropout omitted (inference mode, training=False -> identity).
    return linear_pallas(h, params["fc_flat"]["w"], params["fc_flat"]["b"], "tanh")


class MendGraph:
    def __init__(self, num_pred):
        self.num_pred = num_pred

    def forward(self, x, edge_index, deg_int, gen_feats):
        num_node, num_feature = x.shape
        # view(-1, P, F).view(-1, F) is a pure row-major reshape.
        gen_flat = gen_feats.reshape(-1, num_feature)

        fill_feats = fill_feats_pallas(x, gen_flat)     # enqueued before the host sync

        # Only the tiny (num_node,) int32 vector crosses to the host (D2H was started
        # asynchronously before the generator ran); the variable-length edge list is
        # inherently data-dependent-shape.
        counts = np.asarray(jax.device_get(deg_int)).reshape(-1)[:num_node].astype(np.int64)
        total = int(counts.sum())
        if total > 0:
            src = np.repeat(np.arange(num_node, dtype=np.int64), counts)
            starts = np.cumsum(counts) - counts
            j = np.arange(total, dtype=np.int64) - np.repeat(starts, counts)
            dst = num_node + src * self.num_pred + j
            new_edges = jnp.asarray(np.stack([src, dst], axis=0), dtype=edge_index.dtype)
            fill_edges = jnp.concatenate([edge_index, new_edges], axis=1)
        else:
            fill_edges = edge_index
        return fill_feats, fill_edges


class LocalSagePlus:
    def __init__(self, key, in_channels, out_channels, hidden, gen_hidden,
                 linear=False, num_pred=4):
        self.linear = linear
        self.num_pred = num_pred
        k = jax.random.split(key, 8)
        self.encoder = {"sage1": init_sage(k[0], in_channels, hidden),
                        "sage2": init_sage(k[1], hidden, gen_hidden)}
        self.reg = init_linear(k[2], gen_hidden, 1)
        self.gen = {"fc1": init_linear(k[3], gen_hidden, 256),
                    "fc2": init_linear(k[4], 256, 2048),
                    "fc_flat": init_linear(k[5], 2048, num_pred * in_channels)}
        self.mend = MendGraph(num_pred)
        self.classifier = {"sage1": init_sage(k[6], in_channels, hidden),
                           "sage2": init_sage(k[7], hidden, out_channels)}

    def forward(self, x, edge_index, num_nodes, noise_key):
        enc = gnn_layer_forward(self.encoder, x, edge_index, self.linear)
        # NumPredictor + fused clip/round epilogue.
        degree, deg_int = num_predictor_pallas(enc, self.reg["w"], self.reg["b"],
                                               self.num_pred)
        # Kick off the D2H of the tiny degree vector now so it overlaps the generator.
        if hasattr(deg_int, "copy_to_host_async"):
            deg_int.copy_to_host_async()
        noise = jax.random.normal(noise_key, enc.shape, enc.dtype)
        gen_feat = feat_generator_forward(self.gen, enc, noise)
        mend_feats, mend_edges = self.mend.forward(x, edge_index, deg_int, gen_feat)
        nc_pred = gnn_layer_forward(self.classifier, mend_feats, mend_edges, self.linear)
        return degree, gen_feat, nc_pred[:num_nodes]


# ----------------------------------------------------------------------------
# Pure-JAX / numpy references for the correctness checks.
# The matmul references mirror the kernels' bf16-input / f32-accumulate MXU path.
# ----------------------------------------------------------------------------
_HI = jax.lax.Precision.HIGHEST


def _mm_bf16(a, b):
    return jnp.dot(a.astype(jnp.bfloat16), b.astype(jnp.bfloat16),
                   preferred_element_type=jnp.float32)


def _linear_ref(x, w, b, activation=None):
    y = _mm_bf16(x, w) + b
    if activation == "relu":
        y = jnp.maximum(y, 0.0)
    elif activation == "tanh":
        y = jnp.tanh(y)
    return y


def _sage_ref(p, x, edge_index, activation):
    agg = segment_mean(x, edge_index, x.shape[0])
    ax = jnp.concatenate([agg, x], axis=1)
    w = jnp.concatenate([p["wl"], p["wr"]], axis=0)
    y = _mm_bf16(ax, w) + p["b"]
    if activation == "relu":
        y = jnp.maximum(y, 0.0)
    return y


def gnn_layer_ref(params, x, edge_index, linear):
    h = _sage_ref(params["sage1"], x, edge_index, None if linear else "relu")
    return _sage_ref(params["sage2"], h, edge_index, "relu")


def feat_gen_ref(params, x, noise):
    h = x + noise
    h = _linear_ref(h, params["fc1"]["w"], params["fc1"]["b"], "relu")
    h = _linear_ref(h, params["fc2"]["w"], params["fc2"]["b"], "relu")
    return _linear_ref(h, params["fc_flat"]["w"], params["fc_flat"]["b"], "tanh")


def mend_graph_ref(x, edge_index, pred_degree, gen_feats, num_pred):
    x = np.asarray(x)
    edge_index = np.asarray(edge_index)
    pred_degree = np.asarray(pred_degree).reshape(-1)
    gen_feats = np.asarray(gen_feats)
    num_node, num_feature = x.shape
    gen_flat = gen_feats.reshape(-1, num_pred, num_feature).reshape(-1, num_feature)
    fill_feats = np.vstack((x, gen_flat))
    deg = np.round(pred_degree).astype(np.int32)
    new_edges = []
    for i in range(num_node):
        for j in range(min(num_pred, max(0, int(deg[i])))):
            new_edges.append([i, num_node + i * num_pred + j])
    if new_edges:
        ne = np.asarray(new_edges, dtype=edge_index.dtype).T
        fill_edges = np.hstack((edge_index, ne))
    else:
        fill_edges = edge_index.copy()
    return fill_feats, fill_edges


if __name__ == "__main__":
    key = jax.random.PRNGKey(0)
    num_node, num_edges = 8, 16
    in_channels, hidden, gen_hidden, out_channels, num_pred = 128, 128, 128, 8, 4

    k_model, k_x, k_e, k_noise = jax.random.split(key, 4)
    x = jax.random.normal(k_x, (num_node, in_channels), jnp.float32)
    edge_index = jax.random.randint(k_e, (2, num_edges), 0, num_node, jnp.int32)

    model = LocalSagePlus(k_model, in_channels, out_channels, hidden, gen_hidden,
                          linear=False, num_pred=num_pred)
    degree, gen_feat, nc_pred = model.forward(x, edge_index, num_node, k_noise)
    jax.block_until_ready((degree, gen_feat, nc_pred))

    # --- correctness checks against pure-JAX / numpy references ---
    enc = gnn_layer_forward(model.encoder, x, edge_index, model.linear)
    enc_ref = gnn_layer_ref(model.encoder, x, edge_index, model.linear)
    assert np.allclose(np.asarray(enc), np.asarray(enc_ref), rtol=1e-2, atol=1e-2)

    deg_ref = jnp.maximum(jnp.dot(enc, model.reg["w"], precision=_HI) + model.reg["b"], 0.0)
    assert np.allclose(np.asarray(degree), np.asarray(deg_ref), rtol=1e-2, atol=1e-2)

    noise = jax.random.normal(k_noise, enc.shape, enc.dtype)
    gen_ref = feat_gen_ref(model.gen, enc, noise)
    assert np.allclose(np.asarray(gen_feat), np.asarray(gen_ref), rtol=1e-2, atol=1e-2)

    _, deg_int = num_predictor_pallas(enc, model.reg["w"], model.reg["b"], num_pred)
    mend_feats, mend_edges = model.mend.forward(x, edge_index, deg_int, gen_feat)
    ref_feats, ref_edges = mend_graph_ref(x, edge_index, degree, gen_feat, num_pred)
    assert mend_feats.shape == ref_feats.shape
    assert np.allclose(np.asarray(mend_feats), ref_feats, atol=1e-6)
    assert mend_edges.shape == ref_edges.shape
    assert np.array_equal(np.asarray(mend_edges), ref_edges)

    nc_ref = gnn_layer_ref(model.classifier, mend_feats, mend_edges, model.linear)[:num_node]
    assert np.allclose(np.asarray(nc_pred), np.asarray(nc_ref), rtol=1e-2, atol=1e-2)

    print("KERNEL_OK")
</pallas_src>

<mosaic_0001>
module attributes {stable_mosaic.version = 11 : i64} {
  func.func @_sage_kernel(%arg0: i32, %arg1: memref<8x128xf32, #tpu.memory_space<vmem>>, %arg2: memref<8x128xf32, #tpu.memory_space<vmem>>, %arg3: memref<256x128xbf16, #tpu.memory_space<vmem>>, %arg4: memref<1x128xf32, #tpu.memory_space<vmem>>, %arg5: memref<8x128xf32, #tpu.memory_space<vmem>>) attributes {dimension_semantics = [#tpu.dimension_semantics<parallel>], iteration_bounds = array<i64: 1>, scalar_prefetch = 0 : i64, scratch_operands = 0 : i64, tpu.core_type = #tpu.core_type<tc>, window_params = [{transform_indices = @transform_0, window_bounds = array<i64: 8, 128>}, {transform_indices = @transform_1, window_bounds = array<i64: 8, 128>}, {pipeline_mode = #tpu.pipeline_mode<synchronous>, transform_indices = @transform_2, window_bounds = array<i64: 256, 128>}, {pipeline_mode = #tpu.pipeline_mode<synchronous>, transform_indices = @transform_3, window_bounds = array<i64: 1, 128>}, {transform_indices = @transform_4, window_bounds = array<i64: 8, 128>}]} {
    %c0 = arith.constant 0 : index
    %c0_0 = arith.constant 0 : index
    %0 = vector.load %arg1[%c0, %c0_0] : memref<8x128xf32, #tpu.memory_space<vmem>>, vector<8x128xf32>
    %c0_1 = arith.constant 0 : index
    %c0_2 = arith.constant 0 : index
    %1 = vector.load %arg2[%c0_1, %c0_2] : memref<8x128xf32, #tpu.memory_space<vmem>>, vector<8x128xf32>
    %2 = tpu.concatenate %0, %1 in 1 : vector<8x128xf32>, vector<8x128xf32> -> vector<8x256xf32>
    %3 = arith.truncf %2 : vector<8x256xf32> to vector<8x256xbf16>
    %c0_3 = arith.constant 0 : index
    %c0_4 = arith.constant 0 : index
    %4 = vector.load %arg3[%c0_3, %c0_4] : memref<256x128xbf16, #tpu.memory_space<vmem>>, vector<256x128xbf16>
    %cst = arith.constant dense<0.000000e+00> : vector<8x128xf32>
    %5 = tpu.matmul %3, %4, %cst {dimension_numbers = #tpu.dot_dimension_numbers<[1], [0], [0], [1], [0, 0, 1, 1], [], []>} : vector<8x256xbf16>, vector<256x128xbf16>, vector<8x128xf32> -> vector<8x128xf32>
    %c0_5 = arith.constant 0 : index
    %c0_6 = arith.constant 0 : index
    %6 = vector.load %arg4[%c0_5, %c0_6] : memref<1x128xf32, #tpu.memory_space<vmem>>, vector<1x128xf32>
    %7 = vector.broadcast %6 : vector<1x128xf32> to vector<8x128xf32>
    %8 = arith.addf %5, %7 : vector<8x128xf32>
    %cst_7 = arith.constant 0.000000e+00 : f32
    %9 = vector.broadcast %cst_7 : f32 to vector<8x128xf32>
    %10 = arith.maximumf %8, %9 : vector<8x128xf32>
    %c0_8 = arith.constant 0 : index
    %c0_9 = arith.constant 0 : index
    %11 = vector.load %arg5[%c0_8, %c0_9] : memref<8x128xf32, #tpu.memory_space<vmem>>, vector<8x128xf32>
    tpu.vector_store %arg5[%c0_8, %c0_9], %10 {strides = array<i32>} : memref<8x128xf32, #tpu.memory_space<vmem>>, vector<8x128xf32>,
    return
  }
  func.func @transform_0(%arg0: i32) -> (i32, i32) {
    %c0_i32 = arith.constant 0 : i32
    %c0_i32_0 = arith.constant 0 : i32
    return %arg0, %c0_i32 : i32, i32
  }
  func.func @transform_1(%arg0: i32) -> (i32, i32) {
    %c0_i32 = arith.constant 0 : i32
    %c0_i32_0 = arith.constant 0 : i32
    return %arg0, %c0_i32 : i32, i32
  }
  func.func @transform_2(%arg0: i32) -> (i32, i32) {
    %c0_i32 = arith.constant 0 : i32
    %c0_i32_0 = arith.constant 0 : i32
    %c0_i32_1 = arith.constant 0 : i32
    return %c0_i32, %c0_i32_0 : i32, i32
  }
  func.func @transform_3(%arg0: i32) -> (i32, i32) {
    %c0_i32 = arith.constant 0 : i32
    %c0_i32_0 = arith.constant 0 : i32
    %c0_i32_1 = arith.constant 0 : i32
    return %c0_i32, %c0_i32_0 : i32, i32
  }
  func.func @transform_4(%arg0: i32) -> (i32, i32) {
    %c0_i32 = arith.constant 0 : i32
    %c0_i32_0 = arith.constant 0 : i32
    return %arg0, %c0_i32 : i32, i32
  }
}

</mosaic_0001>

<bundles_post_ra>
// kernel: tpu_custom_call.1
= control target key start
LH: loop header
LB: loop body
LE: loop exit
PB: predicated region body
PF: predicated region fallthrough
CT: control target
= control target key end

     0   :  { %9 = vsyncpa [#allocation3], 0  ;;  %s490_s0 = inlined_call_operand.hbm [shape: f32[8,128], index: 0, kind: input, shape index: {}]   ;;  %s491_s1 = inlined_call_operand.hbm [shape: f32[8,128], index: 1, kind: input, shape index: {}]   ;;  %s492_s2 = inlined_call_operand.hbm [shape: bf16[256,128], index: 2, kind: input, shape index: {}]   ;;  %s493_s3 = inlined_call_operand.vmem [shape: f32[1,128], index: 3, kind: input, shape index: {}]   ;;  %s494_s4 = inlined_call_operand.hbm [shape: f32[8,128], index: 4, kind: output, shape index: {}]  }
   0x1   :  { %10 = vsyncpa [#allocation6], 0 }
   0x2   :  { %11 = vsyncpa [#allocation4], 0  ;;  %s408_s15 = smov [#allocation5]   ;;  %s409_s17 = smov [#allocation2]  }
   0x3   :  { %s28_s16 = sshll.u32 %s408_s15, 4  ;;  %s18_s18 = sshll.u32 %s409_s17, 4  ;;  %s29_s16 = int_to_ptr.vmem [resolvable:$true] %s28_s16  ;;  %s19_s18 = int_to_ptr.vmem [resolvable:$true] %s18_s18 }
   0x4   :  { %s314_s21 = scalar_lea.hbm %s491_s1, 128 }
   0x5   :  { %p315_p0 = scmp.ne.s32.totalorder %s491_s1, %s314_s21  ;;  %p318_p1 = scmp.lt.u32.totalorder %s314_s21, %s491_s1 }
   0x7   :  { %p320_p2 = pnand %p318_p1, %p315_p0 }
   0x9   :  { %323 = shalt.err (!%p320_p2)
}
   0xa   :  { %s324_s26 = scalar_lea.vmem %s29_s16, 128  ;;  %p329_p4 = scmp.lt.s32.totalorder %s29_s16, %s29_s16 }
   0xb   :  { %p325_p3 = scmp.ne.s32.totalorder %s29_s16, %s324_s26  ;;  %p330_p5 = scmp.lt.s32.totalorder %s324_s26, %s324_s26 }
   0xd   :  { %p331_p6 = por %p330_p5, %p329_p4 }
   0xf   :  { %p332_p7 = pnand %p331_p6, %p325_p3 }
  0x11   :  { %335 = shalt.err (!%p332_p7)
}
  0x12   :  { %31 = dma.hbm_to_vmem [thread:$0]  %s491_s1, 128, %s29_s16, [#allocation6]  }
  0x13   :  { %s336_s5 = scalar_lea.hbm %s490_s0, 128 }
  0x14   :  { %p337_p8 = scmp.ne.s32.totalorder %s490_s0, %s336_s5  ;;  %p340_p9 = scmp.lt.u32.totalorder %s336_s5, %s490_s0 }
  0x16   :  { %p342_p10 = pnand %p340_p9, %p337_p8 }
  0x18   :  { %345 = shalt.err (!%p342_p10)
}
  0x19   :  { %s346_s10 = scalar_lea.vmem %s19_s18, 128  ;;  %p351_p12 = scmp.lt.s32.totalorder %s19_s18, %s19_s18 }
  0x1a   :  { %p347_p11 = scmp.ne.s32.totalorder %s19_s18, %s346_s10  ;;  %p352_p13 = scmp.lt.s32.totalorder %s346_s10, %s346_s10 }
  0x1c   :  { %p353_p0 = por %p352_p13, %p351_p12 }
  0x1e   :  { %p354_p1 = pnand %p353_p0, %p347_p11 }
  0x20   :  { %357 = shalt.err (!%p354_p1)
}
  0x21   :  { %21 = dma.hbm_to_vmem [thread:$0]  %s490_s0, 128, %s19_s18, [#allocation3]  }
  0x22   :  { %s410_s12 = smov [#allocation7]   ;;  %s358_s16 = scalar_lea.hbm %s492_s2, 2048 }
  0x23   :  { %s37_s13 = sshll.u32 %s410_s12, 4  ;;  %p359_p2 = scmp.ne.s32.totalorder %s492_s2, %s358_s16  ;;  %s38_s13 = int_to_ptr.vmem [resolvable:$true] %s37_s13 }
  0x24   :  { %p362_p3 = scmp.lt.u32.totalorder %s358_s16, %s492_s2 }
  0x26   :  { %p364_p4 = pnand %p362_p3, %p359_p2 }
  0x28   :  { %367 = shalt.err (!%p364_p4)
}
  0x29   :  { %s368_s22 = scalar_lea.vmem %s38_s13, 2048  ;;  %p373_p6 = scmp.lt.s32.totalorder %s38_s13, %s38_s13 }
  0x2a   :  { %p369_p5 = scmp.ne.s32.totalorder %s38_s13, %s368_s22  ;;  %p374_p7 = scmp.lt.s32.totalorder %s368_s22, %s368_s22 }
  0x2c   :  { %p375_p8 = por %p374_p7, %p373_p6 }
  0x2e   :  { %p376_p9 = pnand %p375_p8, %p369_p5 }
  0x30   :  { %379 = shalt.err (!%p376_p9)
}
  0x31   :  { %s411_s0 = smov 64   ;;  %s412_s18 = smov 4  }
  0x32   :  { %43 = dma.hbm_to_vmem [thread:$0]  %s492_s2, 2048, %s38_s13, [#allocation6], %s411_s0, %s411_s0, %s412_s18  }
  0x33   :  { %402 = dma.done.wait [#allocation3], 128  }
  0x34   :  { %403 = vsyncadd [#allocation3], 4294967168 }
  0x35   :  { %404 = dma.done.wait [#allocation6], 2176  }
  0x36   :  { %405 = vsyncadd [#allocation6], 4294965120  ;;  %v298_v0 = vld [vmem:[#allocation7 + $0x40] sm:$0xff]   ;;  %v300_v2 = vld [vmem:[#allocation7 + $0x48] sm:$0xff]   ;;  %s413_s26 = smov [#allocation8]  }
  0x37   :  { %v299_v1 = vld [vmem:[#allocation7] sm:$0xff]   ;;  %270 = vmatprep.subr.bf16.mxu0 %v298_v0  ;;  %v301_v3 = vld [vmem:[#allocation7 + $0x8] sm:$0xff]   ;;  %v302_v4 = vld [vmem:[#allocation7 + $0x50] sm:$0xff]   ;;  %s243_s27 = sshll.u32 %s413_s26, 4  ;;  %s244_s27 = int_to_ptr.vmem [resolvable:$true] %s243_s27 }
  0x38   :  { %271 = vmatpush3.bf16.msra.mxu0 %v299_v1  ;;  %v303_v5 = vld [vmem:[#allocation7 + $0x10] sm:$0xff]   ;;  %v304_v6 = vld [vmem:[#allocation7 + $0x58] sm:$0xff]   ;;  %v306_v8 = vld [vmem:[#allocation7 + $0x60] sm:$0xff]   ;;  %s380_s28 = scalar_lea.vmem %s244_s27, 128  ;;  %p385_p11 = scmp.lt.s32.totalorder %s244_s27, %s244_s27 }
  0x39   :  { %272 = vmatprep.subr.bf16.mxu0 %v300_v2  ;;  %v305_v7 = vld [vmem:[#allocation7 + $0x18] sm:$0xff]   ;;  %v307_v9 = vld [vmem:[#allocation7 + $0x20] sm:$0xff]   ;;  %v308_v10 = vld [vmem:[#allocation7 + $0x68] sm:$0xff]   ;;  %p381_p10 = scmp.ne.s32.totalorder %s244_s27, %s380_s28  ;;  %p386_p12 = scmp.lt.s32.totalorder %s380_s28, %s380_s28 }
  0x3a   :  { %v57_v11 = vld [vmem:[#allocation5] sm:$0xff]  ;;  %v309_v13 = vld [vmem:[#allocation7 + $0x28] sm:$0xff]   ;;  %v310_v14 = vld [vmem:[#allocation7 + $0x70] sm:$0xff]  }
  0x3b   :  { %v59_v12 = vpack.c.bf16 %v57_v11, %v57_v11  ;;  %v311_v15 = vld [vmem:[#allocation7 + $0x30] sm:$0xff]   ;;  %v312_v16 = vld [vmem:[#allocation7 + $0x78] sm:$0xff]   ;;  %p387_p13 = por %p386_p12, %p385_p11 }
  0x3c   :  { %273 = vmatpush3.bf16.msra.mxu0 %v301_v3  ;;  %v313_v17 = vld [vmem:[#allocation7 + $0x38] sm:$0xff]   ;;  %v56_v18 = vld [vmem:[#allocation2] sm:$0xff] }
  0x3d   :  { %274 = vmatprep.subr.bf16.mxu0 %v302_v4  ;;  %227 = vmatprep.mubr.bf16.mxu0 %v59_v12  ;;  %v58_v19 = vpack.c.bf16 %v56_v18, %v56_v18  ;;  %v253_v21 = vld [vmem:[%s493_s3] ss:$0 sm:$0xff]  ;;  %p388_p0 = pnand %p387_p13, %p381_p10 }
  0x40   :  { %275 = vmatpush3.bf16.msra.mxu0 %v303_v5 }
  0x41   :  { %276 = vmatprep.subr.bf16.mxu0 %v304_v6 }
  0x44   :  { %277 = vmatpush3.bf16.msra.mxu0 %v305_v7 }
  0x45   :  { %278 = vmatprep.subr.bf16.mxu0 %v306_v8 }
  0x48   :  { %279 = vmatpush3.bf16.msra.mxu0 %v307_v9 }
  0x49   :  { %280 = vmatprep.subr.bf16.mxu0 %v308_v10 }
  0x4c   :  { %281 = vmatpush3.bf16.msra.mxu0 %v309_v13 }
  0x4d   :  { %282 = vmatprep.subr.bf16.mxu0 %v310_v14 }
  0x50   :  { %283 = vmatpush3.bf16.msra.mxu0 %v311_v15 }
  0x51   :  { %284 = vmatprep.subr.bf16.mxu0 %v312_v16 }
  0x54   :  { %285 = vmatpush3.bf16.msra.mxu0 %v313_v17 }
  0x57   :  { %228 = vmatmul.mubr.bf16.vlgmr.msra.gmra.mrb[0].mxu0 %v58_v19 }
 0x12a   :  { %v286_v20 = vpop.f32.mrb[0].mxu0 }
 0x12b   :  { %v287_v22 = vpop.f32.mrb[1].mxu0 }
 0x12c   :  { %v288_v23 = vadd.f32 %v287_v22, %v286_v20  ;;  %v289_v24 = vpop.f32.mrb[2].mxu0 }
 0x12d   :  { %v290_v25 = vpop.f32.mrb[3].mxu0 }
 0x12e   :  { %v230_v26 = vadd.f32 %v288_v23, %v253_v21 }
 0x130   :  { %v235_v27 = vmax.f32 %v230_v26, 0.0 }
 0x132   :  { %236 = vst [vmem:[#allocation8] sm:$0xff] %v235_v27 }
 0x133   :  { %391 = shalt.err (!%p388_p0)
}
 0x134   :  { %s392_s3 = scalar_lea.hbm %s494_s4, 128 }
 0x135   :  { %p393_p1 = scmp.ne.s32.totalorder %s494_s4, %s392_s3  ;;  %p396_p2 = scmp.lt.u32.totalorder %s392_s3, %s494_s4 }
 0x137   :  { %p398_p3 = pnand %p396_p2, %p393_p1 }
 0x139   :  { %401 = shalt.err (!%p398_p3)
}
 0x13a   :  { %246 = dma.vmem_to_hbm [thread:$0]  %s244_s27, 128, %s494_s4, [#allocation4]  }
 0x13b   :  { %406 = dma.done.wait [#allocation4], 128  }
 0x13c   :  { %407 = vsyncadd [#allocation4], 4294967168 }
 0x13d   :  { %250 = vsyncpa [#allocation3], 1 }
 0x13e   :  { %251 = vsyncpa [#allocation6], 1 }
 0x13f   :  { %252 = vsyncpa [#allocation4], 1 }

</bundles_post_ra>
